<compile_context>
chip_gen: v7x
topology: tpu7x:2x2x1
jax: 0.10.0
libtpu: 0.0.40
codegen_flags: <defaults>
</compile_context>

<pallas_src>
import functools

import jax
import jax.numpy as jnp
import numpy as np
from jax.experimental import pallas as pl
from jax.experimental.pallas import tpu as pltpu


def _round_up(a, b):
    return (a + b - 1) // b * b


@functools.lru_cache(maxsize=8)
def _build_bases(L, basis_dtype_name):
    """Forward / inverse half-spectrum DFT bases. Built once per (L, dtype) and cached."""
    basis_dtype = jnp.dtype(basis_dtype_name)
    K = L // 2 + 1
    Kp = max(128, _round_up(K, 128))          # lane-pad the frequency axis
    n = np.arange(L, dtype=np.float64)[:, None]
    k = np.arange(K, dtype=np.float64)[None, :]
    ang = 2.0 * np.pi * n * k / L
    cos = np.cos(ang)                          # (L, K)
    sin = np.sin(ang)                          # (L, K)

    fwd = np.zeros((L, 2 * Kp), np.float64)
    fwd[:, :K] = cos
    fwd[:, Kp:Kp + K] = -sin                   # Fi = -x @ sin

    w = np.full((K,), 2.0 / L)                 # Hermitian weight + 1/L IFFT scale folded in
    w[0] = 1.0 / L
    if L % 2 == 0:
        w[-1] = 1.0 / L
    inv = np.zeros((2 * Kp, L), np.float64)
    inv[:K, :] = w[:, None] * cos.T
    inv[Kp:Kp + K, :] = -(w[:, None]) * sin.T

    return (jnp.asarray(fwd, dtype=basis_dtype),
            jnp.asarray(inv, dtype=basis_dtype),
            Kp)


def _dft_filter_kernel(x_ref, fwd_ref, inv_ref, rec_ref, res_ref, *, k_pad, thr2):
    x = x_ref[...].astype(jnp.float32)                          # (tm, L)

    # Forward half-spectrum DFT: one fused MXU matmul producing [Fr | Fi].
    xf = jnp.dot(x.astype(fwd_ref.dtype), fwd_ref[...],
                 preferred_element_type=jnp.float32)            # (tm, 2*Kp)

    fr = xf[:, :k_pad]
    fi = xf[:, k_pad:]
    keep = (fr * fr + fi * fi) > thr2                           # squared-magnitude test, no sqrt
    xf_f = jnp.concatenate([jnp.where(keep, fr, 0.0),
                            jnp.where(keep, fi, 0.0)], axis=-1)

    # Real part of the inverse DFT (Hermitian weights and 1/L already folded into INV).
    rec = jnp.dot(xf_f.astype(inv_ref.dtype), inv_ref[...],
                  preferred_element_type=jnp.float32)           # (tm, L)

    rec_ref[...] = rec.astype(rec_ref.dtype)
    res_ref[...] = (x - rec).astype(res_ref.dtype)


def afilter_fft_decomper(x, threshold, *, tm=256, basis_dtype=jnp.float32):
    """x: (..., L).  Returns (x_rec, x - x_rec), both with x's shape/dtype.

    basis_dtype=jnp.bfloat16 trades precision for ~2x+ MXU throughput; the default keeps
    float32 so the amplitude mask matches the exact-FFT decision and results hold a 2e-3
    tolerance for any L.
    """
    orig_shape = x.shape
    L = int(orig_shape[-1])
    x2 = x.reshape(-1, L)
    M = x2.shape[0]

    fwd, inv, k_pad = _build_bases(L, jnp.dtype(basis_dtype).name)

    # Row tile: multiple of 8 sublanes, never larger than needed (don't pad a tiny batch
    # up to 128 rows of dead MXU work), capped at `tm` to bound VMEM.
    tm_eff = min(_round_up(max(int(tm), 8), 8), _round_up(M, 8))
    m_pad = _round_up(M, tm_eff)
    if m_pad != M:
        x2 = jnp.pad(x2, ((0, m_pad - M), (0, 0)))

    # thr2 = thr * |thr| keeps the strict ">" semantics for any sign of threshold:
    # mag^2 > thr*|thr|  <=>  |X| > thr   (always true when thr < 0, matching torch).
    thr = float(threshold)
    thr2 = thr * abs(thr)
    kernel = functools.partial(_dft_filter_kernel, k_pad=k_pad, thr2=thr2)

    # VMEM budget: resident bases (pipeline may double-buffer them) + I/O tiles + xf.
    itemsize = jnp.dtype(basis_dtype).itemsize
    basis_bytes = (fwd.size + inv.size) * itemsize
    tile_bytes = 3 * tm_eff * L * 4 + 2 * tm_eff * 2 * k_pad * 4
    vmem_limit = int(min(max(32 << 20, 2 * basis_bytes + 2 * tile_bytes), 64 << 20))

    grid = (m_pad // tm_eff,)
    cost = pl.CostEstimate(
        flops=8 * m_pad * L * k_pad,                   # two (tm,2Kp)-wide matmuls per tile
        transcendentals=0,
        bytes_accessed=(3 * m_pad * L * x.dtype.itemsize + basis_bytes),
    )

    rec, res = pl.pallas_call(
        kernel,
        out_shape=(jax.ShapeDtypeStruct((m_pad, L), x.dtype),
                   jax.ShapeDtypeStruct((m_pad, L), x.dtype)),
        grid_spec=pltpu.PrefetchScalarGridSpec(
            num_scalar_prefetch=0,
            grid=grid,
            in_specs=[
                pl.BlockSpec((tm_eff, L), lambda i: (i, 0)),       # x row tile
                pl.BlockSpec((L, 2 * k_pad), lambda i: (0, 0)),    # forward basis (resident)
                pl.BlockSpec((2 * k_pad, L), lambda i: (0, 0)),    # inverse basis (resident)
            ],
            out_specs=[
                pl.BlockSpec((tm_eff, L), lambda i: (i, 0)),
                pl.BlockSpec((tm_eff, L), lambda i: (i, 0)),
            ],
        ),
        compiler_params=pltpu.CompilerParams(
            dimension_semantics=("parallel",),
            vmem_limit_bytes=vmem_limit,
        ),
        cost_estimate=cost,
    )(x2, fwd, inv)

    rec = rec[:M].reshape(orig_shape)
    res = res[:M].reshape(orig_shape)
    return rec, res


def _reference(x, threshold):
    xf = jnp.fft.fft(x, axis=-1)
    xf_filt = jnp.where(jnp.abs(xf) > threshold, xf, 0.0)
    rec = jnp.real(jnp.fft.ifft(xf_filt, axis=-1)).astype(x.dtype)
    return rec, x - rec


if __name__ == "__main__":
    key = jax.random.PRNGKey(0)
    B, C, L = 2, 4, 128          # (batch, channels, seq) — FFT over the last dim
    threshold = 20.0

    x = jax.random.normal(key, (B, C, L), dtype=jnp.float32)

    rec, res = afilter_fft_decomper(x, threshold)
    jax.block_until_ready((rec, res))

    rec_ref, res_ref = _reference(x, threshold)
    np.testing.assert_allclose(np.asarray(rec), np.asarray(rec_ref), atol=2e-3, rtol=2e-3)
    np.testing.assert_allclose(np.asarray(res), np.asarray(res_ref), atol=2e-3, rtol=2e-3)

    print("KERNEL_OK")
</pallas_src>

<mosaic_0001>
module attributes {stable_mosaic.version = 11 : i64} {
  func.func @_dft_filter_kernel(%arg0: i32, %arg1: memref<8x128xf32, #tpu.memory_space<vmem>>, %arg2: memref<128x256xf32, #tpu.memory_space<vmem>>, %arg3: memref<256x128xf32, #tpu.memory_space<vmem>>, %arg4: memref<8x128xf32, #tpu.memory_space<vmem>>, %arg5: memref<8x128xf32, #tpu.memory_space<vmem>>) attributes {dimension_semantics = [#tpu.dimension_semantics<parallel>], iteration_bounds = array<i64: 1>, scalar_prefetch = 0 : i64, scratch_operands = 0 : i64, tpu.core_type = #tpu.core_type<tc>, window_params = [{transform_indices = @transform_0, window_bounds = array<i64: 8, 128>}, {pipeline_mode = #tpu.pipeline_mode<synchronous>, transform_indices = @transform_1, window_bounds = array<i64: 128, 256>}, {pipeline_mode = #tpu.pipeline_mode<synchronous>, transform_indices = @transform_2, window_bounds = array<i64: 256, 128>}, {transform_indices = @transform_3, window_bounds = array<i64: 8, 128>}, {transform_indices = @transform_4, window_bounds = array<i64: 8, 128>}]} {
    %c0 = arith.constant 0 : index
    %c0_0 = arith.constant 0 : index
    %0 = vector.load %arg1[%c0, %c0_0] : memref<8x128xf32, #tpu.memory_space<vmem>>, vector<8x128xf32>
    %c0_1 = arith.constant 0 : index
    %c0_2 = arith.constant 0 : index
    %1 = vector.load %arg2[%c0_1, %c0_2] : memref<128x256xf32, #tpu.memory_space<vmem>>, vector<128x256xf32>
    %cst = arith.constant dense<0.000000e+00> : vector<8x256xf32>
    %2 = tpu.matmul %0, %1, %cst {dimension_numbers = #tpu.dot_dimension_numbers<[1], [0], [0], [1], [0, 0, 1, 1], [], []>} : vector<8x128xf32>, vector<128x256xf32>, vector<8x256xf32> -> vector<8x256xf32>
    %3 = vector.extract_strided_slice %2 {offsets = [0, 0], sizes = [8, 128], strides = [1, 1]} : vector<8x256xf32> to vector<8x128xf32>
    %4 = vector.extract_strided_slice %2 {offsets = [0, 128], sizes = [8, 128], strides = [1, 1]} : vector<8x256xf32> to vector<8x128xf32>
    %5 = arith.mulf %3, %3 : vector<8x128xf32>
    %6 = arith.mulf %4, %4 : vector<8x128xf32>
    %7 = arith.addf %5, %6 : vector<8x128xf32>
    %cst_3 = arith.constant 4.000000e+02 : f32
    %8 = vector.broadcast %cst_3 : f32 to vector<8x128xf32>
    %9 = arith.cmpf ogt, %7, %8 : vector<8x128xf32>
    %cst_4 = arith.constant 0.000000e+00 : f32
    %10 = vector.broadcast %cst_4 : f32 to vector<8x128xf32>
    %11 = arith.select %9, %3, %10 : vector<8x128xi1>, vector<8x128xf32>
    %cst_5 = arith.constant 0.000000e+00 : f32
    %12 = vector.broadcast %cst_5 : f32 to vector<8x128xf32>
    %13 = arith.select %9, %4, %12 : vector<8x128xi1>, vector<8x128xf32>
    %14 = tpu.concatenate %11, %13 in 1 : vector<8x128xf32>, vector<8x128xf32> -> vector<8x256xf32>
    %c0_6 = arith.constant 0 : index
    %c0_7 = arith.constant 0 : index
    %15 = vector.load %arg3[%c0_6, %c0_7] : memref<256x128xf32, #tpu.memory_space<vmem>>, vector<256x128xf32>
    %cst_8 = arith.constant dense<0.000000e+00> : vector<8x128xf32>
    %16 = tpu.matmul %14, %15, %cst_8 {dimension_numbers = #tpu.dot_dimension_numbers<[1], [0], [0], [1], [0, 0, 1, 1], [], []>} : vector<8x256xf32>, vector<256x128xf32>, vector<8x128xf32> -> vector<8x128xf32>
    %c0_9 = arith.constant 0 : index
    %c0_10 = arith.constant 0 : index
    %17 = vector.load %arg4[%c0_9, %c0_10] : memref<8x128xf32, #tpu.memory_space<vmem>>, vector<8x128xf32>
    tpu.vector_store %arg4[%c0_9, %c0_10], %16 {strides = array<i32>} : memref<8x128xf32, #tpu.memory_space<vmem>>, vector<8x128xf32>,
    %18 = arith.subf %0, %16 : vector<8x128xf32>
    %c0_11 = arith.constant 0 : index
    %c0_12 = arith.constant 0 : index
    %19 = vector.load %arg5[%c0_11, %c0_12] : memref<8x128xf32, #tpu.memory_space<vmem>>, vector<8x128xf32>
    tpu.vector_store %arg5[%c0_11, %c0_12], %18 {strides = array<i32>} : memref<8x128xf32, #tpu.memory_space<vmem>>, vector<8x128xf32>,
    return
  }
  func.func @transform_0(%arg0: i32) -> (i32, i32) {
    %c0_i32 = arith.constant 0 : i32
    %c0_i32_0 = arith.constant 0 : i32
    return %arg0, %c0_i32 : i32, i32
  }
  func.func @transform_1(%arg0: i32) -> (i32, i32) {
    %c0_i32 = arith.constant 0 : i32
    %c0_i32_0 = arith.constant 0 : i32
    %c0_i32_1 = arith.constant 0 : i32
    return %c0_i32, %c0_i32_0 : i32, i32
  }
  func.func @transform_2(%arg0: i32) -> (i32, i32) {
    %c0_i32 = arith.constant 0 : i32
    %c0_i32_0 = arith.constant 0 : i32
    %c0_i32_1 = arith.constant 0 : i32
    return %c0_i32, %c0_i32_0 : i32, i32
  }
  func.func @transform_3(%arg0: i32) -> (i32, i32) {
    %c0_i32 = arith.constant 0 : i32
    %c0_i32_0 = arith.constant 0 : i32
    return %arg0, %c0_i32 : i32, i32
  }
  func.func @transform_4(%arg0: i32) -> (i32, i32) {
    %c0_i32 = arith.constant 0 : i32
    %c0_i32_0 = arith.constant 0 : i32
    return %arg0, %c0_i32 : i32, i32
  }
}

</mosaic_0001>

<bundles_post_ra>
// kernel: tpu_custom_call.1
= control target key start
LH: loop header
LB: loop body
LE: loop exit
PB: predicated region body
PF: predicated region fallthrough
CT: control target
= control target key end

     0   :  { %10 = vsyncpa [#allocation3], 0  ;;  %s626_s0 = inlined_call_operand.hbm [shape: f32[8,128], index: 0, kind: input, shape index: {}]   ;;  %s627_s1 = inlined_call_operand.hbm [shape: f32[128,256], index: 1, kind: input, shape index: {}]   ;;  %s628_s2 = inlined_call_operand.hbm [shape: f32[256,128], index: 2, kind: input, shape index: {}]   ;;  %s629_s3 = inlined_call_operand.hbm [shape: f32[8,128], index: 3, kind: output, shape index: {0}]   ;;  %s630_s4 = inlined_call_operand.hbm [shape: f32[8,128], index: 4, kind: output, shape index: {1}]  }
   0x1   :  { %11 = vsyncpa [#allocation6], 0 }
   0x2   :  { %12 = vsyncpa [#allocation4], 0 }
   0x3   :  { %13 = vsyncpa [#allocation10], 0  ;;  %s531_s15 = smov [#allocation5]   ;;  %s413_s19 = scalar_lea.hbm %s627_s1, 4096 }
   0x4   :  { %s29_s16 = sshll.u32 %s531_s15, 4  ;;  %p414_p0 = scmp.ne.s32.totalorder %s627_s1, %s413_s19  ;;  %s30_s16 = int_to_ptr.vmem [resolvable:$true] %s29_s16 }
   0x5   :  { %p417_p1 = scmp.lt.u32.totalorder %s413_s19, %s627_s1 }
   0x7   :  { %p419_p2 = pnand %p417_p1, %p414_p0 }
   0x9   :  { %422 = shalt.err (!%p419_p2)
}
   0xa   :  { %s423_s24 = scalar_lea.vmem %s30_s16, 4096  ;;  %p428_p4 = scmp.lt.s32.totalorder %s30_s16, %s30_s16 }
   0xb   :  { %p424_p3 = scmp.ne.s32.totalorder %s30_s16, %s423_s24  ;;  %p429_p5 = scmp.lt.s32.totalorder %s423_s24, %s423_s24 }
   0xd   :  { %p430_p6 = por %p429_p5, %p428_p4 }
   0xf   :  { %p431_p7 = pnand %p430_p6, %p424_p3 }
  0x11   :  { %434 = shalt.err (!%p431_p7)
}
  0x12   :  { %s532_s25 = smov 256   ;;  %s533_s26 = smov 16  }
  0x13   :  { %35 = dma.hbm_to_vmem [thread:$0]  %s627_s1, 4096, %s30_s16, [#allocation6], %s532_s25, %s532_s25, %s533_s26  }
  0x14   :  { %s534_s29 = smov [#allocation2]   ;;  %s535_s5 = smov [#allocation7]  }
  0x15   :  { %s20_s30 = sshll.u32 %s534_s29, 4  ;;  %s41_s6 = sshll.u32 %s535_s5, 4  ;;  %s21_s30 = int_to_ptr.vmem [resolvable:$true] %s20_s30  ;;  %s42_s6 = int_to_ptr.vmem [resolvable:$true] %s41_s6 }
  0x16   :  { %s435_s9 = scalar_lea.hbm %s626_s0, 128 }
  0x17   :  { %p436_p8 = scmp.ne.s32.totalorder %s626_s0, %s435_s9  ;;  %p439_p9 = scmp.lt.u32.totalorder %s435_s9, %s626_s0 }
  0x19   :  { %p441_p10 = pnand %p439_p9, %p436_p8 }
  0x1b   :  { %444 = shalt.err (!%p441_p10)
}
  0x1c   :  { %s445_s1 = scalar_lea.vmem %s21_s30, 128  ;;  %p450_p12 = scmp.lt.s32.totalorder %s21_s30, %s21_s30 }
  0x1d   :  { %p446_p11 = scmp.ne.s32.totalorder %s21_s30, %s445_s1  ;;  %p451_p13 = scmp.lt.s32.totalorder %s445_s1, %s445_s1 }
  0x1f   :  { %p452_p0 = por %p451_p13, %p450_p12 }
  0x21   :  { %p453_p1 = pnand %p452_p0, %p446_p11 }
  0x23   :  { %456 = shalt.err (!%p453_p1)
}
  0x24   :  { %23 = dma.hbm_to_vmem [thread:$0]  %s626_s0, 128, %s21_s30, [#allocation3]  }
  0x25   :  { %s457_s18 = scalar_lea.hbm %s628_s2, 4096 }
  0x26   :  { %p458_p2 = scmp.ne.s32.totalorder %s628_s2, %s457_s18  ;;  %p461_p3 = scmp.lt.u32.totalorder %s457_s18, %s628_s2 }
  0x28   :  { %p463_p4 = pnand %p461_p3, %p458_p2 }
  0x2a   :  { %466 = shalt.err (!%p463_p4)
}
  0x2b   :  { %s467_s23 = scalar_lea.vmem %s42_s6, 4096  ;;  %p472_p6 = scmp.lt.s32.totalorder %s42_s6, %s42_s6 }
  0x2c   :  { %p468_p5 = scmp.ne.s32.totalorder %s42_s6, %s467_s23  ;;  %p473_p7 = scmp.lt.s32.totalorder %s467_s23, %s467_s23 }
  0x2e   :  { %p474_p8 = por %p473_p7, %p472_p6 }
  0x30   :  { %p475_p9 = pnand %p474_p8, %p468_p5 }
  0x32   :  { %478 = shalt.err (!%p475_p9)
}
  0x33   :  { %s536_s0 = smov 128   ;;  %s537_s24 = smov 8  }
  0x34   :  { %47 = dma.hbm_to_vmem [thread:$0]  %s628_s2, 4096, %s42_s6, [#allocation6], %s536_s0, %s536_s0, %s537_s24  }
  0x35   :  { %523 = dma.done.wait [#allocation3], 128  }
  0x36   :  { %524 = vsyncadd [#allocation3], 4294967168 }
  0x37   :  { %525 = dma.done.wait [#allocation6], 8192  }
  0x38   :  { %526 = vsyncadd [#allocation6], 4294959104  ;;  %v538_v0 = vmov 0.0   ;;  %v59_v1 = vld [vmem:[#allocation5 + $0x8] sm:$0xff]  ;;  %v61_v2 = vld [vmem:[#allocation5 + $0x18] sm:$0xff]  ;;  %s539_s2 = smov [#allocation8]  }
  0x39   :  { %154 = vmatprep.mubr.f32.mxu0 %v538_v0  ;;  %v58_v3 = vld [vmem:[#allocation5] sm:$0xff]  ;;  %v339_v4 = vpack.c.bf16 %v61_v2, %v59_v1  ;;  %v60_v5 = vld [vmem:[#allocation5 + $0x10] sm:$0xff]  ;;  %v63_v6 = vld [vmem:[#allocation5 + $0x28] sm:$0xff]  ;;  %s278_s27 = sshll.u32 %s539_s2, 4  ;;  %s540_s28 = smov [#allocation9]   ;;  %s279_s27 = int_to_ptr.vmem [resolvable:$true] %s278_s27 }
  0x3a   :  { %v65_v7 = vld [vmem:[#allocation5 + $0x38] sm:$0xff]  ;;  %v341_v8 = vpack.c.bf16 %v60_v5, %v58_v3  ;;  %v62_v10 = vld [vmem:[#allocation5 + $0x20] sm:$0xff]  ;;  %v64_v11 = vld [vmem:[#allocation5 + $0x30] sm:$0xff]  ;;  %s288_s29 = sshll.u32 %s540_s28, 4  ;;  %s479_s30 = scalar_lea.vmem %s279_s27, 128  ;;  %s289_s29 = int_to_ptr.vmem [resolvable:$true] %s288_s29 }
  0x3b   :  { %v343_v9 = vpack.c.bf16 %v65_v7, %v63_v6  ;;  %v67_v12 = vld [vmem:[#allocation5 + $0x48] sm:$0xff]  ;;  %340 = vmatprep.subr.bf16.mxu0 %v339_v4  ;;  %v69_v13 = vld [vmem:[#allocation5 + $0x58] sm:$0xff]  ;;  %v345_v14 = vpack.c.bf16 %v64_v11, %v62_v10  ;;  %v66_v16 = vld [vmem:[#allocation5 + $0x40] sm:$0xff]  ;;  %p480_p10 = scmp.ne.s32.totalorder %s279_s27, %s479_s30  ;;  %p484_p11 = scmp.lt.s32.totalorder %s279_s27, %s279_s27 }
  0x3c   :  { %342 = vmatpush1.bf16.msra.mxu0 %v341_v8  ;;  %v347_v15 = vpack.c.bf16 %v69_v13, %v67_v12  ;;  %v68_v17 = vld [vmem:[#allocation5 + $0x50] sm:$0xff]  ;;  %v71_v18 = vld [vmem:[#allocation5 + $0x68] sm:$0xff]  ;;  %v73_v19 = vld [vmem:[#allocation5 + $0x78] sm:$0xff]  ;;  %p485_p12 = scmp.lt.s32.totalorder %s479_s30, %s479_s30 }
  0x3d   :  { %344 = vmatprep.subr.bf16.mxu0 %v343_v9  ;;  %v349_v20 = vpack.c.bf16 %v68_v17, %v66_v16  ;;  %v351_v21 = vpack.c.bf16 %v73_v19, %v71_v18  ;;  %v70_v22 = vld [vmem:[#allocation5 + $0x60] sm:$0xff]  ;;  %v72_v23 = vld [vmem:[#allocation5 + $0x70] sm:$0xff]  ;;  %v75_v24 = vld [vmem:[#allocation5 + $0x88] sm:$0xff] }
  0x3e   :  { %v77_v25 = vld [vmem:[#allocation5 + $0x98] sm:$0xff]  ;;  %v74_v26 = vld [vmem:[#allocation5 + $0x80] sm:$0xff]  ;;  %v76_v27 = vld [vmem:[#allocation5 + $0x90] sm:$0xff]  ;;  %v353_v31 = vpack.c.bf16 %v72_v23, %v70_v22  ;;  %p486_p13 = por %p485_p12, %p484_p11 }
  0x3f   :  { %v183_v28 = vld [vmem:[#allocation7 + $0x80] sm:$0xff]  ;;  %v184_v29 = vld [vmem:[#allocation7 + $0x88] sm:$0xff]  ;;  %v185_v34 = vld [vmem:[#allocation7 + $0x90] sm:$0xff]  ;;  %v355_v36 = vpack.c.bf16 %v77_v25, %v75_v24  ;;  %v357_v46 = vpack.c.bf16 %v76_v27, %v74_v26 }
  0x40   :  { %346 = vmatpush1.bf16.msra.mxu0 %v345_v14  ;;  %v167_v30 = vld [vmem:[#allocation7] sm:$0xff]  ;;  %v371_v32 = vpack.c.bf16 %v184_v29, %v183_v28  ;;  %v168_v33 = vld [vmem:[#allocation7 + $0x8] sm:$0xff]  ;;  %v186_v35 = vld [vmem:[#allocation7 + $0x98] sm:$0xff]  ;;  %p487_p0 = pnand %p486_p13, %p480_p10 }
  0x41   :  { %348 = vmatprep.subr.bf16.mxu0 %v347_v15  ;;  %v373_v37 = vpack.c.bf16 %v168_v33, %v167_v30  ;;  %v375_v38 = vpack.c.bf16 %v186_v35, %v185_v34  ;;  %v169_v39 = vld [vmem:[#allocation7 + $0x10] sm:$0xff]  ;;  %v170_v40 = vld [vmem:[#allocation7 + $0x18] sm:$0xff]  ;;  %v187_v41 = vld [vmem:[#allocation7 + $0xa0] sm:$0xff] }
  0x42   :  { %v79_v42 = vld [vmem:[#allocation5 + $0xa8] sm:$0xff]  ;;  %v81_v43 = vld [vmem:[#allocation5 + $0xb8] sm:$0xff]  ;;  %372 = vmatprep.subr.bf16.mxu1 %v371_v32  ;;  %v377_v45 = vpack.c.bf16 %v170_v40, %v169_v39  ;;  %v78_v47 = vld [vmem:[#allocation5 + $0xa0] sm:$0xff] }
  0x43   :  { %v188_v44 = vld [vmem:[#allocation7 + $0xa8] sm:$0xff]  ;;  %374 = vmatpush3.bf16.msra.mxu1 %v373_v37  ;;  %v171_v49 = vld [vmem:[#allocation7 + $0x20] sm:$0xff]  ;;  %v359_v51 = vpack.c.bf16 %v81_v43, %v79_v42  ;;  %v80_v52 = vld [vmem:[#allocation5 + $0xb0] sm:$0xff] }
  0x44   :  { %350 = vmatpush1.bf16.msra.mxu0 %v349_v20  ;;  %376 = vmatprep.subr.bf16.mxu1 %v375_v38  ;;  %v379_v48 = vpack.c.bf16 %v188_v44, %v187_v41  ;;  %v172_v50 = vld [vmem:[#allocation7 + $0x28] sm:$0xff]  ;;  %v189_v53 = vld [vmem:[#allocation7 + $0xb0] sm:$0xff]  ;;  %v190_v54 = vld [vmem:[#allocation7 + $0xb8] sm:$0xff]  ;;  %v361_v58 = vpack.c.bf16 %v80_v52, %v78_v47 }
  0x45   :  { %352 = vmatprep.subr.bf16.mxu0 %v351_v21  ;;  %v83_v55 = vld [vmem:[#allocation5 + $0xc8] sm:$0xff]  ;;  %v85_v56 = vld [vmem:[#allocation5 + $0xd8] sm:$0xff]  ;;  %v381_v57 = vpack.c.bf16 %v172_v50, %v171_v49  ;;  %v82_v59 = vld [vmem:[#allocation5 + $0xc0] sm:$0xff]  ;;  %v383_v60 = vpack.c.bf16 %v190_v54, %v189_v53 }
  0x46   :  { %v173_v61 = vld [vmem:[#allocation7 + $0x30] sm:$0xff]  ;;  %v174_v62 = vld [vmem:[#allocation7 + $0x38] sm:$0xff]  ;;  %v363_v63 = vpack.c.bf16 %v85_v56, %v83_v55  ;;  %v191_v1 = vld [vmem:[#allocation7 + $0xc0] sm:$0xff] }
  0x47   :  { %378 = vmatpush3.bf16.msra.mxu1 %v377_v45  ;;  %v84_v0 = vld [vmem:[#allocation5 + $0xd0] sm:$0xff]  ;;  %v192_v2 = vld [vmem:[#allocation7 + $0xc8] sm:$0xff]  ;;  %v89_v4 = vld [vmem:[#allocation5 + $0xf8] sm:$0xff]  ;;  %v385_v5 = vpack.c.bf16 %v174_v62, %v173_v61 }
  0x48   :  { %354 = vmatpush1.bf16.msra.mxu0 %v353_v31  ;;  %380 = vmatprep.subr.bf16.mxu1 %v379_v48  ;;  %v87_v3 = vld [vmem:[#allocation5 + $0xe8] sm:$0xff]  ;;  %v365_v6 = vpack.c.bf16 %v84_v0, %v82_v59  ;;  %v86_v7 = vld [vmem:[#allocation5 + $0xe0] sm:$0xff]  ;;  %v387_v8 = vpack.c.bf16 %v192_v2, %v191_v1  ;;  %v88_v12 = vld [vmem:[#allocation5 + $0xf0] sm:$0xff] }
  0x49   :  { %356 = vmatprep.subr.bf16.mxu0 %v355_v36  ;;  %v175_v9 = vld [vmem:[#allocation7 + $0x40] sm:$0xff]  ;;  %v176_v10 = vld [vmem:[#allocation7 + $0x48] sm:$0xff]  ;;  %v367_v11 = vpack.c.bf16 %v89_v4, %v87_v3  ;;  %v193_v13 = vld [vmem:[#allocation7 + $0xd0] sm:$0xff]  ;;  %v369_v16 = vpack.c.bf16 %v88_v12, %v86_v7 }
  0x4a   :  { %v194_v14 = vld [vmem:[#allocation7 + $0xd8] sm:$0xff]  ;;  %v389_v15 = vpack.c.bf16 %v176_v10, %v175_v9  ;;  %v177_v18 = vld [vmem:[#allocation7 + $0x50] sm:$0xff]  ;;  %v195_v22 = vld [vmem:[#allocation7 + $0xe0] sm:$0xff] }
  0x4b   :  { %382 = vmatpush3.bf16.msra.mxu1 %v381_v57  ;;  %v391_v17 = vpack.c.bf16 %v194_v14, %v193_v13  ;;  %v178_v19 = vld [vmem:[#allocation7 + $0x58] sm:$0xff]  ;;  %v196_v23 = vld [vmem:[#allocation7 + $0xe8] sm:$0xff]  ;;  %v179_v25 = vld [vmem:[#allocation7 + $0x60] sm:$0xff] }
  0x4c   :  { %358 = vmatpush1.bf16.msra.mxu0 %v357_v46  ;;  %384 = vmatprep.subr.bf16.mxu1 %v383_v60  ;;  %v393_v20 = vpack.c.bf16 %v178_v19, %v177_v18  ;;  %v57_v21 = vld [vmem:[#allocation2] sm:$0xff]  ;;  %v395_v24 = vpack.c.bf16 %v196_v23, %v195_v22  ;;  %v180_v26 = vld [vmem:[#allocation7 + $0x68] sm:$0xff]  ;;  %v197_v28 = vld [vmem:[#allocation7 + $0xf0] sm:$0xff] }
  0x4d   :  { %360 = vmatprep.subr.bf16.mxu0 %v359_v51  ;;  %v397_v27 = vpack.c.bf16 %v180_v26, %v179_v25  ;;  %v198_v29 = vld [vmem:[#allocation7 + $0xf8] sm:$0xff]  ;;  %v181_v31 = vld [vmem:[#allocation7 + $0x70] sm:$0xff] }
  0x4e   :  { %v399_v30 = vpack.c.bf16 %v198_v29, %v197_v28  ;;  %v182_v32 = vld [vmem:[#allocation7 + $0x78] sm:$0xff] }
  0x4f   :  { %386 = vmatpush3.bf16.msra.mxu1 %v385_v5  ;;  %v401_v33 = vpack.c.bf16 %v182_v32, %v181_v31 }
  0x50   :  { %362 = vmatpush1.bf16.msra.mxu0 %v361_v58  ;;  %388 = vmatprep.subr.bf16.mxu1 %v387_v8 }
  0x51   :  { %364 = vmatprep.subr.bf16.mxu0 %v363_v63 }
  0x53   :  { %390 = vmatpush3.bf16.msra.mxu1 %v389_v15 }
  0x54   :  { %366 = vmatpush1.bf16.msra.mxu0 %v365_v6  ;;  %392 = vmatprep.subr.bf16.mxu1 %v391_v17 }
  0x55   :  { %368 = vmatprep.subr.bf16.mxu0 %v367_v11 }
  0x57   :  { %394 = vmatpush3.bf16.msra.mxu1 %v393_v20 }
  0x58   :  { %370 = vmatpush1.bf16.msra.mxu0 %v369_v16  ;;  %396 = vmatprep.subr.bf16.mxu1 %v395_v24 }
  0x5b   :  { %155 = vmatmul.mubr.f32.vlgmr.msra.gmra.mrb[0].mxu0 %v57_v21  ;;  %398 = vmatpush3.bf16.msra.mxu1 %v397_v27 }
  0x5c   :  { %400 = vmatprep.subr.bf16.mxu1 %v399_v30 }
  0x5f   :  { %402 = vmatpush3.bf16.msra.mxu1 %v401_v33 }
 0x12e   :  { %v156_v34 = vpop.f32.mrb[0].mxu0 }
 0x12f   :  { %v161_v35 = vmul.f32 %v156_v34, %v156_v34  ;;  %v158_v36 = vpop.f32.mrb[1].mxu0 }
 0x130   :  { %v162_v37 = vmul.f32 %v158_v36, %v158_v36 }
 0x132   :  { %v163_v38 = vadd.f32 %v162_v37, %v161_v35 }
 0x134   :  { %vm164_vm0 = vcmp.gt.f32.partialorder %v163_v38, 400.0 }
 0x135   :  { %302 = vmatprep.mubr.msk.f32.mxu1 %vm164_vm0, %v158_v36 }
 0x136   :  { %303 = vmatmul.mubr.msk.f32.vlgmr.msra.gmra.mrb[0].mxu1 %vm164_vm0, %v156_v34 }
 0x209   :  { %v336_v39 = vpop.f32.mrb[0].mxu1 }
 0x20a   :  { %v337_v40 = vpop.f32.mrb[1].mxu1 }
 0x20b   :  { %v338_v41 = vadd.f32 %v337_v40, %v336_v39 }
 0x20d   :  { %v270_v42 = vsub.f32 %v57_v21, %v338_v41  ;;  %269 = vst [vmem:[#allocation8] sm:$0xff] %v338_v41 }
 0x20e   :  { %490 = shalt.err (!%p487_p0)
}
 0x20f   :  { %s491_s7 = scalar_lea.hbm %s629_s3, 128 }
 0x210   :  { %p492_p1 = scmp.ne.s32.totalorder %s629_s3, %s491_s7  ;;  %p495_p2 = scmp.lt.u32.totalorder %s491_s7, %s629_s3 }
 0x212   :  { %p497_p3 = pnand %p495_p2, %p492_p1 }
 0x214   :  { %500 = shalt.err (!%p497_p3)
}
 0x215   :  { %281 = dma.vmem_to_hbm [thread:$0]  %s279_s27, 128, %s629_s3, [#allocation4]   ;;  %271 = vst [vmem:[#allocation9] sm:$0xff] %v270_v42 }
 0x216   :  { %s501_s1 = scalar_lea.vmem %s289_s29, 128  ;;  %p506_p5 = scmp.lt.s32.totalorder %s289_s29, %s289_s29 }
 0x217   :  { %p502_p4 = scmp.ne.s32.totalorder %s289_s29, %s501_s1  ;;  %p507_p6 = scmp.lt.s32.totalorder %s501_s1, %s501_s1 }
 0x219   :  { %p508_p7 = por %p507_p6, %p506_p5 }
 0x21b   :  { %p509_p8 = pnand %p508_p7, %p502_p4 }
 0x21d   :  { %512 = shalt.err (!%p509_p8)
}
 0x21e   :  { %s513_s16 = scalar_lea.hbm %s630_s4, 128 }
 0x21f   :  { %p514_p9 = scmp.ne.s32.totalorder %s630_s4, %s513_s16  ;;  %p517_p10 = scmp.lt.u32.totalorder %s513_s16, %s630_s4 }
 0x221   :  { %p519_p11 = pnand %p517_p10, %p514_p9 }
 0x223   :  { %522 = shalt.err (!%p519_p11)
}
 0x224   :  { %291 = dma.vmem_to_hbm [thread:$0]  %s289_s29, 128, %s630_s4, [#allocation10]  }
 0x225   :  { %527 = dma.done.wait [#allocation4], 128  }
 0x226   :  { %528 = vsyncadd [#allocation4], 4294967168 }
 0x227   :  { %529 = dma.done.wait [#allocation10], 128  }
 0x228   :  { %530 = vsyncadd [#allocation10], 4294967168 }
 0x229   :  { %298 = vsyncpa [#allocation3], 1 }
 0x22a   :  { %299 = vsyncpa [#allocation6], 1 }
 0x22b   :  { %300 = vsyncpa [#allocation4], 1 }
 0x22c   :  { %301 = vsyncpa [#allocation10], 1 }

</bundles_post_ra>
